<compile_context>
chip_gen: v7x
topology: tpu7x:2x2x1
jax: 0.10.0
libtpu: 0.0.40
codegen_flags: <defaults>
</compile_context>

<pallas_src>
import functools

import jax
import jax.numpy as jnp
from jax.experimental import pallas as pl
from jax.experimental.pallas import tpu as pltpu


def _se_kernel(x_ref, w1_ref, b1_ref, w2_ref, b2_ref, o_ref,
               acc_ref, w1v, b1v, w2v, b2v, sem, *,
               hw, hw_tile, lane_partial):
    # x_ref : (bt, c, hw_tile) streamed activation tile (auto-pipelined)
    # w1_ref: (c, c_mid) HBM (pre-transposed)   b1_ref: (1, c_mid) HBM
    # w2_ref: (c_mid, c) HBM (pre-transposed)   b2_ref: (1, c) HBM
    # o_ref : (bt, c)
    # acc_ref: (bt, c, L) f32 lane-partial sums (L = 128 when hw_tile % 128 == 0)
    # w1v/b1v/w2v/b2v: single-buffered VMEM copies of the params
    # sem   : DMA semaphores for the 4 param copies
    s = pl.program_id(1)
    last = pl.num_programs(1) - 1
    n128 = hw_tile // 128

    @pl.when(s == 0)
    def _init():
        acc_ref[...] = jnp.zeros_like(acc_ref)
        # Single-buffered parameter copies: started here, hidden behind the
        # spatial streaming, waited on only at finalize.
        pltpu.make_async_copy(w1_ref, w1v, sem.at[0]).start()
        pltpu.make_async_copy(b1_ref, b1v, sem.at[1]).start()
        pltpu.make_async_copy(w2_ref, w2v, sem.at[2]).start()
        pltpu.make_async_copy(b2_ref, b2v, sem.at[3]).start()

    def _accumulate(masked):
        if lane_partial:
            # (bt, c, 128) lane partials: per-step work is pure VALU adds
            # over lane-aligned slices; cross-lane reduce only at finalize.
            def chunk(k):
                xc = x_ref[:, :, k * 128:(k + 1) * 128].astype(jnp.float32)
                if masked:
                    col = (jax.lax.broadcasted_iota(jnp.int32, xc.shape, 2)
                           + k * 128)
                    valid = hw - s * hw_tile
                    xc = jnp.where(col < valid, xc, 0.0)
                return xc

            p = chunk(0)
            for k in range(1, n128):
                p = p + chunk(k)
            acc_ref[...] += p
        else:
            xt = x_ref[...].astype(jnp.float32)
            if masked:
                col = jax.lax.broadcasted_iota(jnp.int32, xt.shape, 2)
                valid = hw - s * hw_tile
                xt = jnp.where(col < valid, xt, 0.0)
            acc_ref[...] += jnp.sum(xt, axis=-1, keepdims=True)

    if hw % hw_tile != 0:
        # Ragged spatial extent: only the final step pays for the mask.
        @pl.when(s != last)
        def _acc_full():
            _accumulate(masked=False)

        @pl.when(s == last)
        def _acc_masked():
            _accumulate(masked=True)
    else:
        _accumulate(masked=False)

    @pl.when(s == last)
    def _finalize():
        pltpu.make_async_copy(w1_ref, w1v, sem.at[0]).wait()
        pltpu.make_async_copy(b1_ref, b1v, sem.at[1]).wait()
        pltpu.make_async_copy(w2_ref, w2v, sem.at[2]).wait()
        pltpu.make_async_copy(b2_ref, b2v, sem.at[3]).wait()
        pooled = jnp.sum(acc_ref[...], axis=-1) * (1.0 / float(hw))  # (bt, c)
        # Plain NN matmuls (weights pre-transposed in the wrapper) consumed
        # in their stored dtype; MXU accumulates in f32.
        h = jnp.dot(pooled.astype(w1v.dtype), w1v[...],
                    preferred_element_type=jnp.float32)
        h = jnp.maximum(h + b1v[...].astype(jnp.float32), 0.0)
        y = jnp.dot(h.astype(w2v.dtype), w2v[...],
                    preferred_element_type=jnp.float32)
        y = y + b2v[...].astype(jnp.float32)
        o_ref[...] = jax.nn.sigmoid(y).astype(o_ref.dtype)


def _vmem_capacity_bytes():
    """Per-core VMEM capacity; generation-aware with a conservative fallback."""
    try:
        info = pltpu.get_tpu_info()
        cap = int(getattr(info, "vmem_capacity_bytes", 0))
        if cap > 0:
            return cap
    except Exception:
        pass
    return 64 * 1024 * 1024   # v7x per-TensorCore (most restrictive)


def _pick_b_tile(b):
    # Give the 'parallel' batch axis >= 2 blocks when b allows, keeping the
    # output block's sublane dim a multiple of 8 or the full batch extent.
    if b % 16 == 0 and b > 16:
        return 16
    if b % 8 == 0 and b > 8:
        return 8
    return b


def _resident_vmem_bytes(bt, c, c_mid, w_itemsize, out_itemsize):
    # Everything resident besides the streamed x double-buffer: single-
    # buffered params, worst-case lane-partial accumulator, double-buffered
    # (bt, c) output block, plus compiler-scratch headroom.
    params = (2 * c * c_mid + c_mid + c) * w_itemsize
    acc = bt * c * 128 * 4
    out = 2 * bt * c * out_itemsize
    return params + acc + out + (2 << 20)


def _pick_hw_tile(hw, bt, c, x_itemsize, avail_bytes):
    per_lane = 2 * bt * c * x_itemsize              # double-buffered x tile
    max_lanes = max(128, avail_bytes // per_lane)
    if max_lanes >= hw:
        return hw                                    # single full-extent block
    t = max(128, (max_lanes // 128) * 128)
    t = min(t, 256 * 128)        # bound the unrolled lane-partial add chain
    if hw % 128 == 0:
        # Prefer a multiple-of-128 divisor of hw (no ragged last tile) when
        # it costs at most 2x in tile size.
        blocks = hw // 128
        for d in range(t // 128, 0, -1):
            if blocks % d == 0:
                if 2 * d * 128 >= t:
                    return d * 128
                break
    return t


def se_block(x, w1, b1, w2, b2, *, hw_tile=None):
    """x: (b, c, h, w) NCHW.  PyTorch-layout weights:
       w1: (c//2, c), b1: (c//2,), w2: (c, c//2), b2: (c,).
       Returns the (b, c, 1, 1) sigmoid gate."""
    b, c, h, w = x.shape
    c_mid, c_in = w1.shape
    assert c_in == c and w2.shape == (c, c_mid)
    hw = h * w

    x_flat = x.reshape(b, c, hw)
    # One-time HBM-side transposes so the finalize matmuls are plain NN feeds.
    w1t = jnp.transpose(w1)            # (c, c_mid)
    w2t = jnp.transpose(w2)            # (c_mid, c)
    b1_2d = b1.reshape(1, c_mid)
    b2_2d = b2.reshape(1, c)

    bt = _pick_b_tile(b)
    cap = _vmem_capacity_bytes()
    budget = int(cap * 0.75)           # ~48 MiB on v7x, ~96 MiB on v5e/v6e
    resident = _resident_vmem_bytes(bt, c, c_mid, w1.dtype.itemsize,
                                    x.dtype.itemsize)
    min_avail = 2 * bt * c * x.dtype.itemsize * 128
    avail = max(budget - resident, min_avail)

    if hw_tile is None:
        hw_tile = _pick_hw_tile(hw, bt, c, x.dtype.itemsize, avail)
    hw_tile = min(hw_tile, hw)
    assert hw_tile == hw or hw_tile % 128 == 0, "hw_tile must be 128-aligned"

    num_b = b // bt
    num_s = pl.cdiv(hw, hw_tile)
    lane_partial = (hw_tile % 128 == 0) and (hw_tile // 128 <= 256)
    acc_lane = 128 if lane_partial else 1

    x_bytes = 2 * bt * c * hw_tile * x.dtype.itemsize
    vmem_limit = min(int(cap * 0.9), resident + x_bytes + (8 << 20))
    vmem_limit = max(vmem_limit, 32 * 1024 * 1024)

    kernel = functools.partial(_se_kernel, hw=hw, hw_tile=hw_tile,
                               lane_partial=lane_partial)

    wbytes = (w1.size + w2.size + b1.size + b2.size) * w1.dtype.itemsize
    cost = pl.CostEstimate(
        flops=b * c * hw + 4 * b * c * c_mid,
        transcendentals=b * c,
        bytes_accessed=x_flat.size * x.dtype.itemsize
                       + num_b * wbytes + b * c * x.dtype.itemsize)

    out = pl.pallas_call(
        kernel,
        out_shape=jax.ShapeDtypeStruct((b, c), x.dtype),
        grid_spec=pltpu.PrefetchScalarGridSpec(
            num_scalar_prefetch=0,
            grid=(num_b, num_s),
            in_specs=[
                # Streamed activation tile (auto double-buffered pipeline).
                pl.BlockSpec((bt, c, hw_tile), lambda bi, s: (bi, 0, s)),
                # Params stay in HBM (no dead 2x auto buffer); the kernel
                # copies them once per batch tile into VMEM scratch.
                pl.BlockSpec(memory_space=pl.ANY),
                pl.BlockSpec(memory_space=pl.ANY),
                pl.BlockSpec(memory_space=pl.ANY),
                pl.BlockSpec(memory_space=pl.ANY),
            ],
            out_specs=pl.BlockSpec((bt, c), lambda bi, s: (bi, 0)),
            scratch_shapes=[
                pltpu.VMEM((bt, c, acc_lane), jnp.float32),
                pltpu.VMEM((c, c_mid), w1.dtype),
                pltpu.VMEM((1, c_mid), b1.dtype),
                pltpu.VMEM((c_mid, c), w2.dtype),
                pltpu.VMEM((1, c), b2.dtype),
                pltpu.SemaphoreType.DMA((4,)),
            ],
        ),
        compiler_params=pltpu.CompilerParams(
            dimension_semantics=("parallel", "arbitrary"),
            vmem_limit_bytes=vmem_limit),
        cost_estimate=cost,
    )(x_flat, w1t, b1_2d, w2t, b2_2d)

    return out.reshape(b, c, 1, 1)


def init_params(key, in_c, dtype=jnp.float32):
    """Deterministic params matching nn.Conv2d(in_c, in_c//2, 1) and
    nn.Conv2d(in_c//2, in_c, 1) shapes (1x1 kernels squeezed out)."""
    c_mid = in_c // 2
    k1, k2, k3, k4 = jax.random.split(key, 4)
    bound1 = 1.0 / jnp.sqrt(in_c)
    bound2 = 1.0 / jnp.sqrt(c_mid)
    w1 = jax.random.uniform(k1, (c_mid, in_c), dtype, -bound1, bound1)
    b1 = jax.random.uniform(k2, (c_mid,), dtype, -bound1, bound1)
    w2 = jax.random.uniform(k3, (in_c, c_mid), dtype, -bound2, bound2)
    b2 = jax.random.uniform(k4, (in_c,), dtype, -bound2, bound2)
    return w1, b1, w2, b2


def se_block_ref(x, w1, b1, w2, b2):
    """Pure-JAX reference for correctness checking."""
    b, c, h, w = x.shape
    pooled = x.reshape(b, c, -1).mean(-1)
    hid = jnp.maximum(pooled @ w1.T + b1, 0.0)
    out = jax.nn.sigmoid(hid @ w2.T + b2)
    return out.reshape(b, c, 1, 1)


if __name__ == "__main__":
    key = jax.random.PRNGKey(0)
    kx, kp, kx2, kp2, kx3 = jax.random.split(key, 5)

    # Test 1: auto tile -> single full-extent spatial block, lane partials.
    b, c, h, w = 2, 4, 16, 16
    x = jax.random.normal(kx, (b, c, h, w), jnp.float32)
    w1, b1, w2, b2 = init_params(kp, c)
    out = se_block(x, w1, b1, w2, b2)
    jax.block_until_ready(out)
    ref = se_block_ref(x, w1, b1, w2, b2)
    assert out.shape == (b, c, 1, 1)
    assert jnp.allclose(out, ref, atol=1e-5, rtol=1e-5)

    # Test 2: force a multi-step spatial grid (accumulate + finalize path).
    out2 = se_block(x, w1, b1, w2, b2, hw_tile=128)
    jax.block_until_ready(out2)
    assert jnp.allclose(out2, ref, atol=1e-5, rtol=1e-5)

    # Test 3: ragged spatial extent (h*w = 144) -> gated masked last tile.
    b3, c3, h3, w3 = 2, 8, 12, 12
    x3 = jax.random.normal(kx2, (b3, c3, h3, w3), jnp.float32)
    p3 = init_params(kp2, c3)
    out3 = se_block(x3, *p3, hw_tile=128)
    jax.block_until_ready(out3)
    ref3 = se_block_ref(x3, *p3)
    assert jnp.allclose(out3, ref3, atol=1e-5, rtol=1e-5)

    # Test 4: bf16 activations + bf16 weights (no in-kernel f32 weight cast;
    # MXU consumes bf16 with f32 accumulation). Non-128 hw exercises the
    # fallback accumulation path.
    b4, c4, h4, w4 = 2, 8, 8, 8
    x4 = jax.random.normal(kx3, (b4, c4, h4, w4), jnp.float32)
    p4_f32 = init_params(kp2, c4)
    p4 = tuple(p.astype(jnp.bfloat16) for p in p4_f32)
    out4 = se_block(x4.astype(jnp.bfloat16), *p4)
    jax.block_until_ready(out4)
    ref4 = se_block_ref(x4.astype(jnp.bfloat16).astype(jnp.float32),
                        *(p.astype(jnp.float32) for p in p4))
    assert jnp.allclose(out4.astype(jnp.float32), ref4, atol=3e-2, rtol=3e-2)

    print("KERNEL_OK")
</pallas_src>

<mosaic_0001>
module attributes {stable_mosaic.version = 11 : i64} {
  func.func @_se_kernel(%arg0: i32, %arg1: i32, %arg2: memref<2x4x256xf32, #tpu.memory_space<vmem>>, %arg3: memref<4x2xf32, #tpu.memory_space<any>>, %arg4: memref<1x2xf32, #tpu.memory_space<any>>, %arg5: memref<2x4xf32, #tpu.memory_space<any>>, %arg6: memref<1x4xf32, #tpu.memory_space<any>>, %arg7: memref<2x4xf32, #tpu.memory_space<vmem>>, %arg8: memref<2x4x128xf32, #tpu.memory_space<vmem>>, %arg9: memref<4x2xf32, #tpu.memory_space<vmem>>, %arg10: memref<1x2xf32, #tpu.memory_space<vmem>>, %arg11: memref<2x4xf32, #tpu.memory_space<vmem>>, %arg12: memref<1x4xf32, #tpu.memory_space<vmem>>, %arg13: memref<4x!tpu.dma_semaphore, #tpu.memory_space<semaphore_mem>>) attributes {dimension_semantics = [#tpu.dimension_semantics<parallel>, #tpu.dimension_semantics<arbitrary>], iteration_bounds = array<i64: 1, 1>, scalar_prefetch = 0 : i64, scratch_operands = 6 : i64, tpu.core_type = #tpu.core_type<tc>, window_params = [{transform_indices = @transform_0, window_bounds = array<i64: 2, 4, 256>}, {}, {}, {}, {}, {transform_indices = @transform_5, window_bounds = array<i64: 2, 4>}]} {
    %c0_i32 = arith.constant 0 : i32
    %0 = arith.cmpi eq, %arg1, %c0_i32 : i32
    %1 = arith.extui %0 : i1 to i32
    %c0_i32_0 = arith.constant 0 : i32
    %2 = arith.cmpi ne, %1, %c0_i32_0 : i32
    scf.if %2 {
      %cst = arith.constant 0.000000e+00 : f32
      %12 = vector.broadcast %cst : f32 to vector<2x4x128xf32>
      %c0_13 = arith.constant 0 : index
      %c0_14 = arith.constant 0 : index
      %c0_15 = arith.constant 0 : index
      %13 = vector.load %arg8[%c0_13, %c0_14, %c0_15] : memref<2x4x128xf32, #tpu.memory_space<vmem>>, vector<2x4x128xf32>
      tpu.vector_store %arg8[%c0_13, %c0_14, %c0_15], %12 {strides = array<i32>} : memref<2x4x128xf32, #tpu.memory_space<vmem>>, vector<2x4x128xf32>,
      %c0_i32_16 = arith.constant 0 : i32
      %14 = tpu.memref_slice %arg13[%c0_i32_16] : memref<4x!tpu.dma_semaphore, #tpu.memory_space<semaphore_mem>> -> memref<1x!tpu.dma_semaphore, #tpu.memory_space<semaphore_mem>>
      %15 = tpu.memref_squeeze %14 : memref<1x!tpu.dma_semaphore, #tpu.memory_space<semaphore_mem>> -> memref<!tpu.dma_semaphore, #tpu.memory_space<semaphore_mem>>
      tpu.enqueue_dma source(%arg3 : memref<4x2xf32, #tpu.memory_space<any>>) target(%arg9 : memref<4x2xf32, #tpu.memory_space<vmem>>) target_semaphore(%15 : memref<!tpu.dma_semaphore, #tpu.memory_space<semaphore_mem>>)
      %c1_i32 = arith.constant 1 : i32
      %16 = tpu.memref_slice %arg13[%c1_i32] : memref<4x!tpu.dma_semaphore, #tpu.memory_space<semaphore_mem>> -> memref<1x!tpu.dma_semaphore, #tpu.memory_space<semaphore_mem>>
      %17 = tpu.memref_squeeze %16 : memref<1x!tpu.dma_semaphore, #tpu.memory_space<semaphore_mem>> -> memref<!tpu.dma_semaphore, #tpu.memory_space<semaphore_mem>>
      tpu.enqueue_dma source(%arg4 : memref<1x2xf32, #tpu.memory_space<any>>) target(%arg10 : memref<1x2xf32, #tpu.memory_space<vmem>>) target_semaphore(%17 : memref<!tpu.dma_semaphore, #tpu.memory_space<semaphore_mem>>)
      %c2_i32 = arith.constant 2 : i32
      %18 = tpu.memref_slice %arg13[%c2_i32] : memref<4x!tpu.dma_semaphore, #tpu.memory_space<semaphore_mem>> -> memref<1x!tpu.dma_semaphore, #tpu.memory_space<semaphore_mem>>
      %19 = tpu.memref_squeeze %18 : memref<1x!tpu.dma_semaphore, #tpu.memory_space<semaphore_mem>> -> memref<!tpu.dma_semaphore, #tpu.memory_space<semaphore_mem>>
      tpu.enqueue_dma source(%arg5 : memref<2x4xf32, #tpu.memory_space<any>>) target(%arg11 : memref<2x4xf32, #tpu.memory_space<vmem>>) target_semaphore(%19 : memref<!tpu.dma_semaphore, #tpu.memory_space<semaphore_mem>>)
      %c3_i32 = arith.constant 3 : i32
      %20 = tpu.memref_slice %arg13[%c3_i32] : memref<4x!tpu.dma_semaphore, #tpu.memory_space<semaphore_mem>> -> memref<1x!tpu.dma_semaphore, #tpu.memory_space<semaphore_mem>>
      %21 = tpu.memref_squeeze %20 : memref<1x!tpu.dma_semaphore, #tpu.memory_space<semaphore_mem>> -> memref<!tpu.dma_semaphore, #tpu.memory_space<semaphore_mem>>
      tpu.enqueue_dma source(%arg6 : memref<1x4xf32, #tpu.memory_space<any>>) target(%arg12 : memref<1x4xf32, #tpu.memory_space<vmem>>) target_semaphore(%21 : memref<!tpu.dma_semaphore, #tpu.memory_space<semaphore_mem>>)
    } else {
    }
    %c0 = arith.constant 0 : index
    %c0_1 = arith.constant 0 : index
    %c0_2 = arith.constant 0 : index
    %3 = vector.load %arg2[%c0, %c0_1, %c0_2] : memref<2x4x256xf32, #tpu.memory_space<vmem>>, vector<2x4x128xf32>
    %c0_3 = arith.constant 0 : index
    %c0_4 = arith.constant 0 : index
    %c128 = arith.constant 128 : index
    %4 = vector.load %arg2[%c0_3, %c0_4, %c128] : memref<2x4x256xf32, #tpu.memory_space<vmem>>, vector<2x4x128xf32>
    %5 = arith.addf %3, %4 : vector<2x4x128xf32>
    %c0_5 = arith.constant 0 : index
    %c0_6 = arith.constant 0 : index
    %c0_7 = arith.constant 0 : index
    %6 = vector.load %arg8[%c0_5, %c0_6, %c0_7] : memref<2x4x128xf32, #tpu.memory_space<vmem>>, vector<2x4x128xf32>
    %7 = arith.addf %6, %5 : vector<2x4x128xf32>
    %c0_8 = arith.constant 0 : index
    %c0_9 = arith.constant 0 : index
    %c0_10 = arith.constant 0 : index
    %8 = vector.load %arg8[%c0_8, %c0_9, %c0_10] : memref<2x4x128xf32, #tpu.memory_space<vmem>>, vector<2x4x128xf32>
    tpu.vector_store %arg8[%c0_8, %c0_9, %c0_10], %7 {strides = array<i32>} : memref<2x4x128xf32, #tpu.memory_space<vmem>>, vector<2x4x128xf32>,
    %c0_i32_11 = arith.constant 0 : i32
    %9 = arith.cmpi eq, %arg1, %c0_i32_11 : i32
    %10 = arith.extui %9 : i1 to i32
    %c0_i32_12 = arith.constant 0 : i32
    %11 = arith.cmpi ne, %10, %c0_i32_12 : i32
    scf.if %11 {
      %c0_i32_13 = arith.constant 0 : i32
      %12 = tpu.memref_slice %arg13[%c0_i32_13] : memref<4x!tpu.dma_semaphore, #tpu.memory_space<semaphore_mem>> -> memref<1x!tpu.dma_semaphore, #tpu.memory_space<semaphore_mem>>
      %13 = tpu.memref_squeeze %12 : memref<1x!tpu.dma_semaphore, #tpu.memory_space<semaphore_mem>> -> memref<!tpu.dma_semaphore, #tpu.memory_space<semaphore_mem>>
      tpu.wait_dma2 semaphore(%13 : memref<!tpu.dma_semaphore, #tpu.memory_space<semaphore_mem>>) src(%arg3 : memref<4x2xf32, #tpu.memory_space<any>>) dst(%arg9 : memref<4x2xf32, #tpu.memory_space<vmem>>)
      %c1_i32 = arith.constant 1 : i32
      %14 = tpu.memref_slice %arg13[%c1_i32] : memref<4x!tpu.dma_semaphore, #tpu.memory_space<semaphore_mem>> -> memref<1x!tpu.dma_semaphore, #tpu.memory_space<semaphore_mem>>
      %15 = tpu.memref_squeeze %14 : memref<1x!tpu.dma_semaphore, #tpu.memory_space<semaphore_mem>> -> memref<!tpu.dma_semaphore, #tpu.memory_space<semaphore_mem>>
      tpu.wait_dma2 semaphore(%15 : memref<!tpu.dma_semaphore, #tpu.memory_space<semaphore_mem>>) src(%arg4 : memref<1x2xf32, #tpu.memory_space<any>>) dst(%arg10 : memref<1x2xf32, #tpu.memory_space<vmem>>)
      %c2_i32 = arith.constant 2 : i32
      %16 = tpu.memref_slice %arg13[%c2_i32] : memref<4x!tpu.dma_semaphore, #tpu.memory_space<semaphore_mem>> -> memref<1x!tpu.dma_semaphore, #tpu.memory_space<semaphore_mem>>
      %17 = tpu.memref_squeeze %16 : memref<1x!tpu.dma_semaphore, #tpu.memory_space<semaphore_mem>> -> memref<!tpu.dma_semaphore, #tpu.memory_space<semaphore_mem>>
      tpu.wait_dma2 semaphore(%17 : memref<!tpu.dma_semaphore, #tpu.memory_space<semaphore_mem>>) src(%arg5 : memref<2x4xf32, #tpu.memory_space<any>>) dst(%arg11 : memref<2x4xf32, #tpu.memory_space<vmem>>)
      %c3_i32 = arith.constant 3 : i32
      %18 = tpu.memref_slice %arg13[%c3_i32] : memref<4x!tpu.dma_semaphore, #tpu.memory_space<semaphore_mem>> -> memref<1x!tpu.dma_semaphore, #tpu.memory_space<semaphore_mem>>
      %19 = tpu.memref_squeeze %18 : memref<1x!tpu.dma_semaphore, #tpu.memory_space<semaphore_mem>> -> memref<!tpu.dma_semaphore, #tpu.memory_space<semaphore_mem>>
      tpu.wait_dma2 semaphore(%19 : memref<!tpu.dma_semaphore, #tpu.memory_space<semaphore_mem>>) src(%arg6 : memref<1x4xf32, #tpu.memory_space<any>>) dst(%arg12 : memref<1x4xf32, #tpu.memory_space<vmem>>)
      %c0_14 = arith.constant 0 : index
      %c0_15 = arith.constant 0 : index
      %c0_16 = arith.constant 0 : index
      %20 = vector.load %arg8[%c0_14, %c0_15, %c0_16] : memref<2x4x128xf32, #tpu.memory_space<vmem>>, vector<2x4x128xf32>
      %cst = arith.constant dense<0.000000e+00> : vector<2x4xf32>
      %21 = vector.multi_reduction <add>, %20, %cst [2] : vector<2x4x128xf32> to vector<2x4xf32>
      %cst_17 = arith.constant 3.906250e-03 : f32
      %22 = vector.broadcast %cst_17 : f32 to vector<2x4xf32>
      %23 = arith.mulf %21, %22 : vector<2x4xf32>
      %c0_18 = arith.constant 0 : index
      %c0_19 = arith.constant 0 : index
      %24 = vector.load %arg9[%c0_18, %c0_19] : memref<4x2xf32, #tpu.memory_space<vmem>>, vector<4x2xf32>
      %cst_20 = arith.constant dense<0.000000e+00> : vector<2x2xf32>
      %25 = tpu.matmul %23, %24, %cst_20 {dimension_numbers = #tpu.dot_dimension_numbers<[1], [0], [0], [1], [0, 0, 1, 1], [], []>} : vector<2x4xf32>, vector<4x2xf32>, vector<2x2xf32> -> vector<2x2xf32>
      %c0_21 = arith.constant 0 : index
      %c0_22 = arith.constant 0 : index
      %26 = vector.load %arg10[%c0_21, %c0_22] : memref<1x2xf32, #tpu.memory_space<vmem>>, vector<1x2xf32>
      %27 = vector.broadcast %26 : vector<1x2xf32> to vector<2x2xf32>
      %28 = arith.addf %25, %27 : vector<2x2xf32>
      %cst_23 = arith.constant 0.000000e+00 : f32
      %29 = vector.broadcast %cst_23 : f32 to vector<2x2xf32>
      %30 = arith.maximumf %28, %29 : vector<2x2xf32>
      %c0_24 = arith.constant 0 : index
      %c0_25 = arith.constant 0 : index
      %31 = vector.load %arg11[%c0_24, %c0_25] : memref<2x4xf32, #tpu.memory_space<vmem>>, vector<2x4xf32>
      %cst_26 = arith.constant dense<0.000000e+00> : vector<2x4xf32>
      %32 = tpu.matmul %30, %31, %cst_26 {dimension_numbers = #tpu.dot_dimension_numbers<[1], [0], [0], [1], [0, 0, 1, 1], [], []>} : vector<2x2xf32>, vector<2x4xf32>, vector<2x4xf32> -> vector<2x4xf32>
      %c0_27 = arith.constant 0 : index
      %c0_28 = arith.constant 0 : index
      %33 = vector.load %arg12[%c0_27, %c0_28] : memref<1x4xf32, #tpu.memory_space<vmem>>, vector<1x4xf32>
      %34 = vector.broadcast %33 : vector<1x4xf32> to vector<2x4xf32>
      %35 = arith.addf %32, %34 : vector<2x4xf32>
      %36 = arith.negf %35 : vector<2x4xf32>
      %37 = math.exp %36 : vector<2x4xf32>
      %cst_29 = arith.constant 1.000000e+00 : f32
      %38 = vector.broadcast %cst_29 : f32 to vector<2x4xf32>
      %39 = arith.addf %38, %37 : vector<2x4xf32>
      %40 = arith.divf %38, %39 : vector<2x4xf32>
      %c0_30 = arith.constant 0 : index
      %c0_31 = arith.constant 0 : index
      %41 = vector.load %arg7[%c0_30, %c0_31] : memref<2x4xf32, #tpu.memory_space<vmem>>, vector<2x4xf32>
      tpu.vector_store %arg7[%c0_30, %c0_31], %40 {strides = array<i32>} : memref<2x4xf32, #tpu.memory_space<vmem>>, vector<2x4xf32>,
    } else {
    }
    return
  }
  func.func @transform_0(%arg0: i32, %arg1: i32) -> (i32, i32, i32) {
    %c0_i32 = arith.constant 0 : i32
    %c0_i32_0 = arith.constant 0 : i32
    return %arg0, %c0_i32, %arg1 : i32, i32, i32
  }
  func.func @transform_5(%arg0: i32, %arg1: i32) -> (i32, i32) {
    %c0_i32 = arith.constant 0 : i32
    %c0_i32_0 = arith.constant 0 : i32
    return %arg0, %c0_i32 : i32, i32
  }
}

</mosaic_0001>

<bundles_post_ra>
// kernel: tpu_custom_call.1
= control target key start
LH: loop header
LB: loop body
LE: loop exit
PB: predicated region body
PF: predicated region fallthrough
CT: control target
= control target key end

     0   :  { %10 = vsyncpa [#allocation9], 0  ;;  %s690_s0 = inlined_call_operand.hbm [shape: f32[2,4,256], index: 0, kind: input, shape index: {}]   ;;  %s691_s1 = inlined_call_operand.vmem [shape: f32[4,2], index: 1, kind: input, shape index: {}]   ;;  %s692_s2 = inlined_call_operand.vmem [shape: f32[1,2], index: 2, kind: input, shape index: {}]   ;;  %s693_s3 = inlined_call_operand.vmem [shape: f32[2,4], index: 3, kind: input, shape index: {}]   ;;  %s694_s4 = inlined_call_operand.vmem [shape: f32[1,4], index: 4, kind: input, shape index: {}]   ;;  %s695_s5 = inlined_call_operand.hbm [shape: f32[2,4], index: 5, kind: output, shape index: {}]  }
   0x1   :  { %11 = vsyncpa [#allocation10], 0  ;;  %s618_s18 = smov [#allocation8]   ;;  %s562_s22 = scalar_lea.hbm %s690_s0, 256 }
   0x2   :  { %s17_s19 = sshll.u32 %s618_s18, 4  ;;  %p563_p0 = scmp.ne.s32.totalorder %s690_s0, %s562_s22  ;;  %s18_s19 = int_to_ptr.vmem [resolvable:$true] %s17_s19 }
   0x3   :  { %p566_p1 = scmp.lt.u32.totalorder %s562_s22, %s690_s0 }
   0x5   :  { %p568_p2 = pnand %p566_p1, %p563_p0 }
   0x7   :  { %571 = shalt.err (!%p568_p2)
}
   0x8   :  { %s572_s27 = scalar_lea.vmem %s18_s19, 256  ;;  %p577_p4 = scmp.lt.s32.totalorder %s18_s19, %s18_s19 }
   0x9   :  { %p573_p3 = scmp.ne.s32.totalorder %s18_s19, %s572_s27  ;;  %p578_p5 = scmp.lt.s32.totalorder %s572_s27, %s572_s27 }
   0xb   :  { %p579_p6 = por %p578_p5, %p577_p4 }
   0xd   :  { %p580_p7 = pnand %p579_p6, %p573_p3 }
   0xf   :  { %583 = shalt.err (!%p580_p7)
}
  0x10   :  { %s619_s28 = smov 128   ;;  %s620_s29 = smov 8  }
  0x11   :  { %23 = dma.hbm_to_vmem [thread:$0]  %s690_s0, 256, %s18_s19, [#allocation9], %s619_s28, %s619_s28, %s620_s29  }
  0x12   :  { %606 = dma.done.wait [#allocation9], 256  }
  0x13   :  { %607 = vsyncadd [#allocation9], 4294967040  ;;  %v621_v0 = vmov 0.0   ;;  %v50_v1 = vld [vmem:[%s691_s1] sm:$0xf] }
  0x14   :  { %31 = vst [vmem:[#allocation2] sm:$0xf] %v621_v0  ;;  %32 = vst [vmem:[#allocation2 + $0x4] sm:$0xf] %v621_v0 }
  0x15   :  { %51 = vst [vmem:[#allocation3] sm:$0xf] %v50_v1 }
  0x16   :  { %76 = vsyncadd [#allocation7], 64  ;;  %v95_v2 = vld [vmem:[%s692_s2] sm:$0x1] }
  0x17   :  { %96 = vst [vmem:[#allocation4] sm:$0x1] %v95_v2 }
  0x18   :  { %121 = vsyncadd [#allocation7 + $0x1], 16  ;;  %v140_v3 = vld [vmem:[%s693_s3] sm:$0x3] }
  0x19   :  { %141 = vst [vmem:[#allocation5] sm:$0x3] %v140_v3 }
  0x1a   :  { %166 = vsyncadd [#allocation7 + $0x2], 32  ;;  %v185_v4 = vld [vmem:[%s694_s4] sm:$0x1] }
  0x1b   :  { %186 = vst [vmem:[#allocation6] sm:$0x1] %v185_v4 }
  0x1c   :  { %211 = vsyncadd [#allocation7 + $0x3], 16  ;;  %v212_v5 = vld [vmem:[#allocation8] sm:$0xf]  ;;  %v214_v6 = vld [vmem:[#allocation8 + $0x4] sm:$0xf] }
  0x1d   :  { %v216_v7 = vadd.f32 %v214_v6, %v212_v5  ;;  %v218_v8 = vld [vmem:[#allocation2] sm:$0xf]  ;;  %v213_v9 = vld [vmem:[#allocation8 + $0x8] sm:$0xf]  ;;  %v215_v10 = vld [vmem:[#allocation8 + $0xc] sm:$0xf] }
  0x1e   :  { %v217_v11 = vadd.f32 %v215_v10, %v213_v9  ;;  %v219_v12 = vld [vmem:[#allocation2 + $0x4] sm:$0xf] }
  0x1f   :  { %v220_v13 = vadd.f32 %v218_v8, %v216_v7 }
  0x20   :  { %v221_v14 = vadd.f32 %v219_v12, %v217_v11 }
  0x21   :  { %222 = vst [vmem:[#allocation2] sm:$0xf] %v220_v13 }
  0x22   :  { %223 = vst [vmem:[#allocation2 + $0x4] sm:$0xf] %v221_v14 }
  0x23   :  { %608 = dma.done.wait [#allocation7], 64 }
  0x24   :  { %609 = vsyncadd [#allocation7], 4294967232 }
  0x25   :  { %610 = dma.done.wait [#allocation7 + $0x1], 16 }
  0x26   :  { %611 = vsyncadd [#allocation7 + $0x1], 4294967280 }
  0x27   :  { %612 = dma.done.wait [#allocation7 + $0x2], 32 }
  0x28   :  { %613 = vsyncadd [#allocation7 + $0x2], 4294967264 }
  0x29   :  { %614 = dma.done.wait [#allocation7 + $0x3], 16 }
  0x2a   :  { %615 = vsyncadd [#allocation7 + $0x3], 4294967280  ;;  %542 = vmatprep.subr.mxu0 %v621_v0  ;;  %547 = vmatprep.subr.mxu1 %v621_v0  ;;  %vm243_vm0 = vcmask 1043456   ;;  %v241_v15 = vld [vmem:[#allocation2] sm:$0xf]  ;;  %vm622_vm1 = vmmov 0   ;;  %v262_v20 = vlaneseq }
  0x2b   :  { %v242_v16 = vld [vmem:[#allocation2 + $0x4] sm:$0xf]  ;;  %v244_v17 = vsel %vm243_vm0, %v241_v15, 0.0  ;;  %v252_v19 = vld [vmem:[#allocation3] sm:$0xf]  ;;  %544 = vmatprep.mubr.msk.f32.mxu0 %vm622_vm1, %v621_v0  ;;  %549 = vmatprep.mubr.msk.f32.mxu1 %vm622_vm1, %v621_v0  ;;  %vm272_vm2 = vcmask 1041409  }
  0x2c   :  { %245 = vadd.xlane.f32.xlu0 %v244_v17  ;;  %v247_v18 = vsel %vm243_vm0, %v242_v16, 0.0  ;;  %543 = vmatpush3.msk.msra.mxu0 %vm243_vm0, %v252_v19  ;;  %v263_v21 = vand.u32 127, %v262_v20  ;;  %v265_v22 = vshrl.u32 %v262_v20, 7  ;;  %vm274_vm3 = vcmask 31744   ;;  %v351_v31 = vld [vmem:[#allocation5] sm:$0x3] }
  0x2d   :  { %vm363_vm4 = vcmask 1041408   ;;  %v527_v32 = vld [vmem:[#allocation4] ss:$0 sm:$0xff]  ;;  %vm359_vm5 = vcmask 15360   ;;  %v530_v37 = vld [vmem:[#allocation6] ss:$0 sm:$0xff] }
  0x2e   :  { %v266_v24 = vsub.s32 %v263_v21, %v265_v22  ;;  %548 = vmatpush3.msk.msra.mxu1 %vm363_vm4, %v351_v31  ;;  %s623_s1 = smov [#allocation11]   ;;  %vm443_vm6 = vcmask 25600  }
  0x2f   :  { %s451_s2 = sshll.u32 %s623_s1, 4  ;;  %s452_s2 = int_to_ptr.vmem [resolvable:$true] %s451_s2 }
  0x30   :  { %248 = vadd.xlane.f32.xlu0 %v247_v18  ;;  %s584_s3 = scalar_lea.vmem %s452_s2, 32  ;;  %p589_p9 = scmp.lt.s32.totalorder %s452_s2, %s452_s2 }
  0x31   :  { %p585_p8 = scmp.ne.s32.totalorder %s452_s2, %s584_s3  ;;  %p590_p10 = scmp.lt.s32.totalorder %s584_s3, %s584_s3 }
  0x33   :  { %p591_p11 = por %p590_p10, %p589_p9 }
  0x35   :  { %p592_p12 = pnand %p591_p11, %p585_p8 }
  0xb9   :  { %v246_v23 = vpop.xlane.xlu0 %245 }
  0xba   :  { %v250_v25 = vmul.f32 0.00390625, %v246_v23 }
  0xbc   :  { %v267_v28 = vrot.slane %v250_v25, %v266_v24 }
  0xbd   :  { %v249_v26 = vpop.xlane.xlu0 %248 }
  0xbe   :  { %v251_v27 = vmul.f32 0.00390625, %v249_v26 }
  0xc0   :  { %v271_v29 = vrot.slane %v251_v27, %v266_v24 }
  0xc2   :  { %v273_v30 = vsel %vm272_vm2, %v271_v29, %v267_v28 }
  0xc3   :  { %545 = vmatmul.mubr.msk.f32.vlgmr.msra.gmra.mrb[0].mxu0 %vm274_vm3, %v273_v30 }
 0x196   :  { %v346_v33 = vpop.f32.mrb[0].mxu0 }
 0x197   :  { %v347_v34 = vadd.f32 %v527_v32, %v346_v33  ;;  %v546_v35 = vpop.f32.mrb[1].mxu0 }
 0x199   :  { %v350_v36 = vmax.f32 %v347_v34, 0.0 }
 0x19b   :  { %550 = vmatmul.mubr.msk.f32.vlgmr.msra.gmra.mrb[0].mxu1 %vm359_vm5, %v350_v36 }
 0x26e   :  { %v433_v38 = vpop.f32.mrb[0].mxu1 }
 0x26f   :  { %v434_v39 = vadd.f32 %v530_v37, %v433_v38  ;;  %v551_v40 = vpop.f32.mrb[1].mxu1 }
 0x271   :  { %v533_v41 = vmul.f32 -1.442695, %v434_v39 }
 0x273   :  { %558 = vpow2.f32 %v533_v41 }
 0x27d   :  { %v559_v42 = vpop.eup %558 }
 0x27e   :  { %v440_v43 = vadd.f32 1.0, %v559_v42 }
 0x280   :  { %560 = vrcp.f32 %v440_v43 }
 0x28a   :  { %v561_v44 = vpop.eup %560 }
 0x28b   :  { %444 = vst.msk [vmem:[#allocation11] sm:$0x3] %vm443_vm6, %v561_v44 }
 0x28c   :  { %595 = shalt.err (!%p592_p12)
}
 0x28d   :  { %s596_s15 = scalar_lea.hbm %s695_s5, 32 }
 0x28e   :  { %p597_p13 = scmp.ne.s32.totalorder %s695_s5, %s596_s15  ;;  %p600_p0 = scmp.lt.u32.totalorder %s596_s15, %s695_s5 }
 0x290   :  { %p602_p1 = pnand %p600_p0, %p597_p13 }
 0x292   :  { %605 = shalt.err (!%p602_p1)
}
 0x293   :  { %454 = dma.vmem_to_hbm [thread:$0]  %s452_s2, 32, %s695_s5, [#allocation10]  }
 0x294   :  { %616 = dma.done.wait [#allocation10], 32  }
 0x295   :  { %617 = vsyncadd [#allocation10], 4294967264 }
 0x296   :  { %458 = vsyncpa [#allocation9], 1 }
 0x297   :  { %459 = vsyncpa [#allocation10], 1 }
 0x298   :  { %460 = vsyncmov [#allocation7] }
 0x29b   :  { %s461_s22 = vpop.sfrf %460 }
 0x29c   :  { %p534_p2 = scmp.ne.s32.totalorder %s461_s22, 0 }
 0x29e   :  { %465 = shalt.err (%p534_p2)  }
 0x29f   :  { %467 = vsyncmov [#allocation7 + $0x1] }
 0x2a2   :  { %s468_s23 = vpop.sfrf %467 }
 0x2a3   :  { %p535_p3 = scmp.ne.s32.totalorder %s468_s23, 0 }
 0x2a5   :  { %472 = shalt.err (%p535_p3)  }
 0x2a6   :  { %474 = vsyncmov [#allocation7 + $0x2] }
 0x2a9   :  { %s475_s24 = vpop.sfrf %474 }
 0x2aa   :  { %p536_p4 = scmp.ne.s32.totalorder %s475_s24, 0 }
 0x2ac   :  { %479 = shalt.err (%p536_p4)  }
 0x2ad   :  { %481 = vsyncmov [#allocation7 + $0x3] }
 0x2b0   :  { %s482_s25 = vpop.sfrf %481 }
 0x2b1   :  { %p537_p5 = scmp.ne.s32.totalorder %s482_s25, 0 }
 0x2b3   :  { %486 = shalt.err (%p537_p5)  }

</bundles_post_ra>
